<compile_context>
chip_gen: v7x
topology: tpu7x:2x2x1
jax: 0.10.0
libtpu: 0.0.40
codegen_flags: <defaults>
</compile_context>

<pallas_src>
import functools
import math

import jax
import jax.numpy as jnp
from jax.experimental import pallas as pl
from jax.experimental.pallas import tpu as pltpu

EPS = 1e-07


def _round_up(v, m):
    return ((v + m - 1) // m) * m


def _sum_log_kernel(x_ref, out_ref, *, bsz, n_cols, shift,
                    row_ragged, col_ragged, unroll):
    """Per (tm, tc) tile: out = sum over valid rows of log(x + shift),
    reduced over 8-sublane groups to a lane-dense (8, tc) partial."""
    tm, tc = x_ref.shape
    i = pl.program_id(0)
    j = pl.program_id(1)

    def accumulate(masked):
        # Hoist mask constants out of the loop (broadcast_in_dim is not CSE'd).
        if masked:
            if col_ragged:
                col = jax.lax.broadcasted_iota(jnp.int32, (8, tc), 1) + j * tc
                col_ok = col < n_cols
            if row_ragged:
                sub = jax.lax.broadcasted_iota(jnp.int32, (8, tc), 0)
                row_base = i * tm

        def body(g, acc):
            off = pl.multiple_of(g * 8, 8)
            xg = x_ref[pl.ds(off, 8), :].astype(jnp.float32)
            vg = jnp.log(xg + shift)
            if masked:
                ok = None
                if col_ragged:
                    ok = col_ok
                if row_ragged:
                    r_ok = (row_base + off + sub) < bsz
                    ok = r_ok if ok is None else (ok & r_ok)
                # Select (not multiply-by-mask) so NaN/Inf from OOB garbage in
                # the partial trailing block can never propagate into the sum.
                vg = jnp.where(ok, vg, 0.0)
            return acc + vg

        acc0 = jnp.zeros((8, tc), jnp.float32)
        out_ref[...] = jax.lax.fori_loop(0, tm // 8, body, acc0, unroll=unroll)

    if not (row_ragged or col_ragged):
        # Exact tiling: never pay the mask cost.
        accumulate(masked=False)
    else:
        edge = None
        if row_ragged:
            edge = i == pl.num_programs(0) - 1
        if col_ragged:
            c_edge = j == pl.num_programs(1) - 1
            edge = c_edge if edge is None else (edge | c_edge)

        @pl.when(edge)
        def _():
            accumulate(masked=True)

        @pl.when(jnp.logical_not(edge))
        def _():
            accumulate(masked=False)


def contrast_loss(x, n_data):
    """Pallas implementation of ContrastLoss.forward.

    x: [bsz, m+1] (or [bsz, m+1, 1]) positive/negative scores.
    Returns a scalar float32 loss (same value as the PyTorch module).
    """
    x = jnp.asarray(x)
    if x.ndim > 2:
        if math.prod(x.shape[2:]) != 1:
            raise ValueError("trailing dims of x must be singleton")
        x = x.reshape(x.shape[0], x.shape[1])
    if x.ndim != 2:
        raise ValueError("x must be [bsz, m+1] (optionally with trailing 1s)")

    bsz, n_cols = x.shape
    m = n_cols - 1
    pn = 1.0 / float(n_data)
    noise = float(m) * pn
    shift = noise + EPS

    # Lane dim: multiple of 128, up to 2048 (f32) / 4096 (narrow dtypes).
    # Sublane dim: multiple of 8, up to 512.  ~4 MiB f32 input block ->
    # ~8 MiB double-buffered, safe under v5e's 16 MiB default scoped VMEM.
    tc_cap = 2048 if jnp.dtype(x.dtype).itemsize >= 4 else 4096
    tc = min(tc_cap, _round_up(n_cols, 128))
    tm = min(512, _round_up(bsz, 8))
    grid = (pl.cdiv(bsz, tm), pl.cdiv(n_cols, tc))
    row_ragged = (bsz % tm) != 0
    col_ragged = (n_cols % tc) != 0

    kernel = functools.partial(
        _sum_log_kernel,
        bsz=bsz, n_cols=n_cols, shift=shift,
        row_ragged=row_ragged, col_ragged=col_ragged,
        unroll=max(1, min(8, tm // 8)))

    partials = pl.pallas_call(
        kernel,
        out_shape=jax.ShapeDtypeStruct((grid[0] * 8, grid[1] * tc), jnp.float32),
        grid=grid,
        in_specs=[pl.BlockSpec((tm, tc), lambda i, j: (i, j))],
        out_specs=pl.BlockSpec((8, tc), lambda i, j: (i, j)),
        compiler_params=pltpu.CompilerParams(
            dimension_semantics=("parallel", "parallel")),
    )(x)

    # S = sum over all valid elements of log(x + noise + eps)  (from kernel).
    s_all = jnp.sum(partials)
    # Tiny closed-form / [bsz]-sized pieces stay in plain XLA:
    #   sum(log_D1) + sum(log_D0)
    #     = sum(log x[:,0]) + bsz*m*log(noise) - S
    pos_extra = jnp.sum(jnp.log(x[:, 0].astype(jnp.float32)))
    neg_const = float(bsz) * float(m) * math.log(noise) if m > 0 else 0.0
    return -(pos_extra + neg_const - s_all) / float(bsz)


def _reference_contrast_loss(x, n_data):
    """Pure-JAX reference mirroring the PyTorch ContrastLoss.forward."""
    x = jnp.asarray(x)
    if x.ndim > 2:
        x = x.reshape(x.shape[0], x.shape[1])
    bsz, n_cols = x.shape
    m = n_cols - 1
    pn = 1.0 / float(n_data)
    p_pos = x[:, 0].astype(jnp.float32)
    p_neg = x[:, 1:].astype(jnp.float32)
    log_d1 = jnp.log(p_pos / (p_pos + m * pn + EPS))
    log_d0 = jnp.log((m * pn) / (p_neg + m * pn + EPS))
    return -(jnp.sum(log_d1) + jnp.sum(log_d0)) / bsz


if __name__ == "__main__":
    key = jax.random.PRNGKey(0)
    k1, k2, k3 = jax.random.split(key, 3)

    # CRD-style small shape: bsz=8, 1 positive + 16 negatives, trailing 1 dim.
    x1 = jax.random.uniform(k1, (8, 17, 1), minval=0.05, maxval=1.0,
                            dtype=jnp.float32)
    l1 = jax.block_until_ready(contrast_loss(x1, 128))
    r1 = _reference_contrast_loss(x1, 128)
    assert jnp.allclose(l1, r1, rtol=5e-4, atol=5e-4), (l1, r1)

    # Multi-column-tile shape: exercises the mask-free interior fast path and
    # the masked ragged edge tile (2301 cols -> two 2048-wide column tiles).
    x2 = jax.random.uniform(k2, (16, 2301), minval=0.01, maxval=1.0,
                            dtype=jnp.float32)
    l2 = jax.block_until_ready(contrast_loss(x2, 5000))
    r2 = _reference_contrast_loss(x2, 5000)
    assert jnp.allclose(l2, r2, rtol=5e-4, atol=5e-4), (l2, r2)

    # Ragged rows and columns (bsz=20 -> 24-row block, 301 -> 384-col block).
    x3 = jax.random.uniform(k3, (20, 301), minval=0.02, maxval=1.0,
                            dtype=jnp.float32)
    l3 = jax.block_until_ready(contrast_loss(x3, 1000))
    r3 = _reference_contrast_loss(x3, 1000)
    assert jnp.allclose(l3, r3, rtol=5e-4, atol=5e-4), (l3, r3)

    print("KERNEL_OK")
</pallas_src>

<mosaic_0001>
module attributes {stable_mosaic.version = 11 : i64} {
  func.func @_sum_log_kernel(%arg0: i32, %arg1: i32, %arg2: memref<8x128xf32, #tpu.memory_space<vmem>>, %arg3: memref<8x128xf32, #tpu.memory_space<vmem>>) attributes {dimension_semantics = [#tpu.dimension_semantics<parallel>, #tpu.dimension_semantics<parallel>], iteration_bounds = array<i64: 1, 1>, scalar_prefetch = 0 : i64, scratch_operands = 0 : i64, tpu.core_type = #tpu.core_type<tc>, window_params = [{transform_indices = @transform_0, window_bounds = array<i64: 8, 128>}, {transform_indices = @transform_1, window_bounds = array<i64: 8, 128>}]} {
    %c0_i32 = arith.constant 0 : i32
    %0 = arith.cmpi eq, %arg1, %c0_i32 : i32
    %1 = arith.extui %0 : i1 to i32
    %c0_i32_0 = arith.constant 0 : i32
    %2 = arith.cmpi ne, %1, %c0_i32_0 : i32
    scf.if %2 {
      %6 = tpu.iota {dimensions = array<i32: 1>} : vector<8x128xi32>
      %c128_i32 = arith.constant 128 : i32
      %7 = arith.muli %arg1, %c128_i32 : i32
      %8 = vector.broadcast %7 : i32 to vector<8x128xi32>
      %9 = arith.addi %6, %8 : vector<8x128xi32>
      %c17_i32 = arith.constant 17 : i32
      %10 = vector.broadcast %c17_i32 : i32 to vector<8x128xi32>
      %11 = arith.cmpi slt, %9, %10 : vector<8x128xi32>
      %cst = arith.constant 0.000000e+00 : f32
      %12 = vector.broadcast %cst : f32 to vector<8x128xf32>
      %c0_i32_2 = arith.constant 0 : i32
      %c8_i32 = arith.constant 8 : i32
      %13 = arith.muli %c0_i32_2, %c8_i32 : i32
      %14 = tpu.assume_multiple %13, 8 : i32
      %15 = arith.index_cast %14 : i32 to index
      %c0 = arith.constant 0 : index
      %16 = vector.load %arg2[%15, %c0] : memref<8x128xf32, #tpu.memory_space<vmem>>, vector<8x128xf32>
      %cst_3 = arith.constant 0.125000104 : f32
      %17 = vector.broadcast %cst_3 : f32 to vector<8x128xf32>
      %18 = arith.addf %16, %17 : vector<8x128xf32>
      %19 = math.log %18 : vector<8x128xf32>
      %cst_4 = arith.constant 0.000000e+00 : f32
      %20 = vector.broadcast %cst_4 : f32 to vector<8x128xf32>
      %21 = arith.select %11, %19, %20 : vector<8x128xi1>, vector<8x128xf32>
      %22 = arith.addf %12, %21 : vector<8x128xf32>
      %c1_i32 = arith.constant 1 : i32
      %c0_5 = arith.constant 0 : index
      %c0_6 = arith.constant 0 : index
      %23 = vector.load %arg3[%c0_5, %c0_6] : memref<8x128xf32, #tpu.memory_space<vmem>>, vector<8x128xf32>
      tpu.vector_store %arg3[%c0_5, %c0_6], %22 {strides = array<i32>} : memref<8x128xf32, #tpu.memory_space<vmem>>, vector<8x128xf32>,
    } else {
    }
    %true = arith.constant true
    %3 = arith.xori %0, %true : i1
    %4 = arith.extui %3 : i1 to i32
    %c0_i32_1 = arith.constant 0 : i32
    %5 = arith.cmpi ne, %4, %c0_i32_1 : i32
    scf.if %5 {
      %cst = arith.constant 0.000000e+00 : f32
      %6 = vector.broadcast %cst : f32 to vector<8x128xf32>
      %c0_i32_2 = arith.constant 0 : i32
      %c8_i32 = arith.constant 8 : i32
      %7 = arith.muli %c0_i32_2, %c8_i32 : i32
      %8 = tpu.assume_multiple %7, 8 : i32
      %9 = arith.index_cast %8 : i32 to index
      %c0 = arith.constant 0 : index
      %10 = vector.load %arg2[%9, %c0] : memref<8x128xf32, #tpu.memory_space<vmem>>, vector<8x128xf32>
      %cst_3 = arith.constant 0.125000104 : f32
      %11 = vector.broadcast %cst_3 : f32 to vector<8x128xf32>
      %12 = arith.addf %10, %11 : vector<8x128xf32>
      %13 = math.log %12 : vector<8x128xf32>
      %14 = arith.addf %6, %13 : vector<8x128xf32>
      %c1_i32 = arith.constant 1 : i32
      %c0_4 = arith.constant 0 : index
      %c0_5 = arith.constant 0 : index
      %15 = vector.load %arg3[%c0_4, %c0_5] : memref<8x128xf32, #tpu.memory_space<vmem>>, vector<8x128xf32>
      tpu.vector_store %arg3[%c0_4, %c0_5], %14 {strides = array<i32>} : memref<8x128xf32, #tpu.memory_space<vmem>>, vector<8x128xf32>,
    } else {
    }
    return
  }
  func.func @transform_0(%arg0: i32, %arg1: i32) -> (i32, i32) {
    %c0_i32 = arith.constant 0 : i32
    return %arg0, %arg1 : i32, i32
  }
  func.func @transform_1(%arg0: i32, %arg1: i32) -> (i32, i32) {
    %c0_i32 = arith.constant 0 : i32
    return %arg0, %arg1 : i32, i32
  }
}

</mosaic_0001>

<bundles_post_ra>
// kernel: tpu_custom_call.1
= control target key start
LH: loop header
LB: loop body
LE: loop exit
PB: predicated region body
PF: predicated region fallthrough
CT: control target
= control target key end

     0   :  { %6 = vsyncpa [#allocation3], 0  ;;  %s151_s0 = inlined_call_operand.hbm [shape: f32[8,17], index: 0, kind: input, shape index: {}]   ;;  %s152_s1 = inlined_call_operand.hbm [shape: f32[8,128], index: 1, kind: output, shape index: {}]  }
   0x1   :  { %7 = vsyncpa [#allocation4], 0  ;;  %s115_s6 = smov [#allocation2]   ;;  %s67_s10 = scalar_lea.hbm %s151_s0, 128 }
   0x2   :  { %s14_s7 = sshll.u32 %s115_s6, 4  ;;  %p68_p0 = scmp.ne.s32.totalorder %s151_s0, %s67_s10  ;;  %s15_s7 = int_to_ptr.vmem [resolvable:$true] %s14_s7 }
   0x3   :  { %p71_p1 = scmp.lt.u32.totalorder %s67_s10, %s151_s0 }
   0x5   :  { %p73_p2 = pnand %p71_p1, %p68_p0 }
   0x7   :  { %76 = shalt.err (!%p73_p2)
}
   0x8   :  { %s77_s15 = scalar_lea.vmem %s15_s7, 128  ;;  %p82_p4 = scmp.lt.s32.totalorder %s15_s7, %s15_s7 }
   0x9   :  { %p78_p3 = scmp.ne.s32.totalorder %s15_s7, %s77_s15  ;;  %p83_p5 = scmp.lt.s32.totalorder %s77_s15, %s77_s15 }
   0xb   :  { %p84_p6 = por %p83_p5, %p82_p4 }
   0xd   :  { %p85_p7 = pnand %p84_p6, %p78_p3 }
   0xf   :  { %88 = shalt.err (!%p85_p7)
}
  0x10   :  { %17 = dma.hbm_to_vmem [thread:$0]  %s151_s0, 128, %s15_s7, [#allocation3]  }
  0x11   :  { %111 = dma.done.wait [#allocation3], 128  }
  0x12   :  { %112 = vsyncadd [#allocation3], 4294967168  ;;  %v31_v0 = vld [vmem:[#allocation2] sm:$0xff]  ;;  %v25_v2 = vlaneseq  ;;  %s116_s18 = smov [#allocation5]  }
  0x13   :  { %v32_v1 = vadd.f32 0.1250001, %v31_v0  ;;  %s54_s19 = sshll.u32 %s116_s18, 4  ;;  %s55_s19 = int_to_ptr.vmem [resolvable:$true] %s54_s19 }
  0x14   :  { %v26_v3 = vand.u32 127, %v25_v2  ;;  %s89_s20 = scalar_lea.vmem %s55_s19, 128  ;;  %p94_p9 = scmp.lt.s32.totalorder %s55_s19, %s55_s19 }
  0x15   :  { %65 = vlog2.f32 %v32_v1  ;;  %p90_p8 = scmp.ne.s32.totalorder %s55_s19, %s89_s20  ;;  %p95_p10 = scmp.lt.s32.totalorder %s89_s20, %s89_s20 }
  0x16   :  { %vm30_vm0 = vcmp.lt.s32.totalorder %v26_v3, 17 }
  0x17   :  { %p96_p11 = por %p95_p10, %p94_p9 }
  0x19   :  { %p97_p12 = pnand %p96_p11, %p90_p8 }
  0x1f   :  { %v66_v4 = vpop.eup %65 }
  0x20   :  { %v34_v5 = vmul.f32 0.6931472, %v66_v4 }
  0x22   :  { %v35_v6 = vsel %vm30_vm0, %v34_v5, 0.0 }
  0x23   :  { %37 = vst [vmem:[#allocation5] sm:$0xff] %v35_v6 }
  0x24   :  { %100 = shalt.err (!%p97_p12)
}
  0x25   :  { %s101_s22 = scalar_lea.hbm %s152_s1, 128 }
  0x26   :  { %p102_p13 = scmp.ne.s32.totalorder %s152_s1, %s101_s22  ;;  %p105_p0 = scmp.lt.u32.totalorder %s101_s22, %s152_s1 }
  0x28   :  { %p107_p1 = pnand %p105_p0, %p102_p13 }
  0x2a   :  { %110 = shalt.err (!%p107_p1)
}
  0x2b   :  { %57 = dma.vmem_to_hbm [thread:$0]  %s55_s19, 128, %s152_s1, [#allocation4]  }
  0x2c   :  { %113 = dma.done.wait [#allocation4], 128  }
  0x2d   :  { %114 = vsyncadd [#allocation4], 4294967168 }
  0x2e   :  { %61 = vsyncpa [#allocation3], 1 }
  0x2f   :  { %62 = vsyncpa [#allocation4], 1 }

</bundles_post_ra>
